<compile_context>
chip_gen: v7x
topology: tpu7x:2x2x1
jax: 0.10.0
libtpu: 0.0.40
codegen_flags: <defaults>
</compile_context>

<pallas_src>
import functools

import jax
import jax.numpy as jnp
from jax.experimental import pallas as pl
from jax.experimental.pallas import tpu as pltpu

HIDDEN = 128        # nn.Linear(state_dim, 128)
LANE_PAD = 128      # lane-dense width used for the in-register logits/softmax
TILE_B_MAX = 1024   # rows per grid step (buffers are tiny; well under VMEM on all gens)


def _round_up(x, m):
    return ((x + m - 1) // m) * m


def actor_kernel(x_ref, w1_ref, b1_ref, w2_ref, b2_ref, out_ref):
    # ---- Linear(state_dim, 128) on the MXU (f32 operands; MXU has slack) ----
    h = jnp.dot(x_ref[...], w1_ref[...], preferred_element_type=jnp.float32)
    h = jnp.maximum(h + b1_ref[...], 0.0)                      # +bias, ReLU

    # ---- Linear(128, action_dim) padded to 128 lanes: bf16 operands, f32 acc ----
    # Padded lanes get bias -1e30 (kept in f32) so they exp() to exactly 0 and
    # contribute no probability mass.
    logits = jnp.dot(h.astype(jnp.bfloat16), w2_ref[...],
                     preferred_element_type=jnp.float32) + b2_ref[...]

    # ---- numerically stable softmax(dim=-1), all in registers ----
    m = jnp.max(logits, axis=-1, keepdims=True)
    e = jnp.exp(logits - m)
    denom = jnp.sum(e, axis=-1, keepdims=True)
    inv = 1.0 / denom                       # exact: rows must sum to 1 for Categorical

    # ---- store only the real action lanes (no padded HBM writeback) ----
    a = out_ref.shape[1]
    out_ref[...] = (e[:, :a] * inv).astype(out_ref.dtype)


def prepare_params(w1, b1, w2, b2):
    """One-time padding / casting of the weights (hoisted out of the per-step call)."""
    hidden = w1.shape[1]
    action_dim = w2.shape[1]
    assert action_dim <= LANE_PAD, "action_dim > 128 would need a wider pad"
    w1f = w1.astype(jnp.float32)
    b1p = b1.reshape(1, hidden).astype(jnp.float32)
    # w2 resident in bf16 (halves the resident buffer, ~3x fewer MXU passes).
    w2p = jnp.zeros((hidden, LANE_PAD), jnp.bfloat16).at[:, :action_dim].set(
        w2.astype(jnp.bfloat16))
    # pad bias stays f32 at -1e30 so padded lanes exp() to 0.
    b2p = jnp.full((1, LANE_PAD), -1e30, jnp.float32).at[:, :action_dim].set(
        b2.reshape(1, -1).astype(jnp.float32))
    return w1f, b1p, w2p, b2p


@functools.partial(jax.jit, static_argnames=("action_dim",))
def actor_forward(x, w1, b1p, w2p, b2p, *, action_dim):
    x = x.astype(jnp.float32)
    B, state_dim = x.shape
    hidden = w1.shape[1]

    # Batch tiling: no explicit zero-pad of x (Pallas handles the ragged last block;
    # its rows are never written back).  For larger batches keep >= 2 grid steps so
    # v7x's two TensorCores both get work; rows-per-tile stays a multiple of 8.
    if B <= 8:
        tile_b = B                                   # single (possibly partial) tile
    else:
        tile_b = min(TILE_B_MAX, _round_up(pl.cdiv(B, 2), 8))
    grid = (pl.cdiv(B, tile_b),)

    out = pl.pallas_call(
        actor_kernel,
        out_shape=jax.ShapeDtypeStruct((B, action_dim), jnp.float32),
        grid=grid,
        in_specs=[
            pl.BlockSpec((tile_b, state_dim), lambda i: (i, 0)),   # x: streamed
            pl.BlockSpec((state_dim, hidden), lambda i: (0, 0)),   # w1: resident
            pl.BlockSpec((1, hidden), lambda i: (0, 0)),           # b1: resident
            pl.BlockSpec((hidden, LANE_PAD), lambda i: (0, 0)),    # w2 (bf16): resident
            pl.BlockSpec((1, LANE_PAD), lambda i: (0, 0)),         # b2 (-1e30 pad): resident
        ],
        out_specs=pl.BlockSpec((tile_b, action_dim), lambda i: (i, 0)),
        compiler_params=pltpu.CompilerParams(
            dimension_semantics=("parallel",)),                    # v7x: 2 TCs share batch
    )(x, w1, b1p, w2p, b2p)

    return out


def actor_reference(x, w1, b1, w2, b2):
    h = jnp.maximum(x @ w1 + b1.reshape(1, -1), 0.0)
    return jax.nn.softmax(h @ w2 + b2.reshape(1, -1), axis=-1)


def init_params(key, state_dim, action_dim):
    # He (kaiming) init on weights, zero biases, deterministic from key.
    k1, k2 = jax.random.split(key)
    w1 = jax.random.normal(k1, (state_dim, HIDDEN), jnp.float32) * jnp.sqrt(2.0 / state_dim)
    b1 = jnp.zeros((1, HIDDEN), jnp.float32)
    w2 = jax.random.normal(k2, (HIDDEN, action_dim), jnp.float32) * jnp.sqrt(2.0 / HIDDEN)
    b2 = jnp.zeros((1, action_dim), jnp.float32)
    return w1, b1, w2, b2


# TODO(synk): act()'s Categorical sampling, the Adam optimizer, and the REINFORCE
# loss/backward are training-loop utilities (not the module forward) and are left
# to the host program.

if __name__ == "__main__":
    key = jax.random.PRNGKey(0)
    kx, kp, kb = jax.random.split(key, 3)

    state_dim, action_dim = 4, 2
    w1, b1, w2, b2 = init_params(kp, state_dim, action_dim)
    w1f, b1p, w2p, b2p = prepare_params(w1, b1, w2, b2)   # one-time pad/cast

    # small per-env-step batch (latency path, single tile)
    B = 8
    x = jax.random.normal(kx, (B, state_dim), jnp.float32)
    probs = actor_forward(x, w1f, b1p, w2p, b2p, action_dim=action_dim)
    jax.block_until_ready(probs)
    ref = actor_reference(x, w1, b1, w2, b2)
    assert probs.shape == (B, action_dim)
    assert jnp.allclose(jnp.sum(probs, axis=-1), 1.0, atol=5e-3)
    assert jnp.allclose(probs, ref, atol=5e-3, rtol=5e-3)

    # larger vectorized-env batch: exercises the ragged multi-step grid path
    Bbig = 1000
    xb = jax.random.normal(kb, (Bbig, state_dim), jnp.float32)
    probs_b = actor_forward(xb, w1f, b1p, w2p, b2p, action_dim=action_dim)
    jax.block_until_ready(probs_b)
    ref_b = actor_reference(xb, w1, b1, w2, b2)
    assert probs_b.shape == (Bbig, action_dim)
    assert jnp.allclose(jnp.sum(probs_b, axis=-1), 1.0, atol=5e-3)
    assert jnp.allclose(probs_b, ref_b, atol=5e-3, rtol=5e-3)

    print("KERNEL_OK")
</pallas_src>

<mosaic_0001>
module attributes {stable_mosaic.version = 11 : i64} {
  func.func @actor_kernel(%arg0: i32, %arg1: memref<8x4xf32, #tpu.memory_space<vmem>>, %arg2: memref<4x128xf32, #tpu.memory_space<vmem>>, %arg3: memref<1x128xf32, #tpu.memory_space<vmem>>, %arg4: memref<128x128xbf16, #tpu.memory_space<vmem>>, %arg5: memref<1x128xf32, #tpu.memory_space<vmem>>, %arg6: memref<8x2xf32, #tpu.memory_space<vmem>>) attributes {dimension_semantics = [#tpu.dimension_semantics<parallel>], iteration_bounds = array<i64: 1>, scalar_prefetch = 0 : i64, scratch_operands = 0 : i64, tpu.core_type = #tpu.core_type<tc>, window_params = [{transform_indices = @transform_0, window_bounds = array<i64: 8, 4>}, {pipeline_mode = #tpu.pipeline_mode<synchronous>, transform_indices = @transform_1, window_bounds = array<i64: 4, 128>}, {pipeline_mode = #tpu.pipeline_mode<synchronous>, transform_indices = @transform_2, window_bounds = array<i64: 1, 128>}, {pipeline_mode = #tpu.pipeline_mode<synchronous>, transform_indices = @transform_3, window_bounds = array<i64: 128, 128>}, {pipeline_mode = #tpu.pipeline_mode<synchronous>, transform_indices = @transform_4, window_bounds = array<i64: 1, 128>}, {transform_indices = @transform_5, window_bounds = array<i64: 8, 2>}]} {
    %c0 = arith.constant 0 : index
    %c0_0 = arith.constant 0 : index
    %0 = vector.load %arg1[%c0, %c0_0] : memref<8x4xf32, #tpu.memory_space<vmem>>, vector<8x4xf32>
    %c0_1 = arith.constant 0 : index
    %c0_2 = arith.constant 0 : index
    %1 = vector.load %arg2[%c0_1, %c0_2] : memref<4x128xf32, #tpu.memory_space<vmem>>, vector<4x128xf32>
    %cst = arith.constant dense<0.000000e+00> : vector<8x128xf32>
    %2 = tpu.matmul %0, %1, %cst {dimension_numbers = #tpu.dot_dimension_numbers<[1], [0], [0], [1], [0, 0, 1, 1], [], []>} : vector<8x4xf32>, vector<4x128xf32>, vector<8x128xf32> -> vector<8x128xf32>
    %c0_3 = arith.constant 0 : index
    %c0_4 = arith.constant 0 : index
    %3 = vector.load %arg3[%c0_3, %c0_4] : memref<1x128xf32, #tpu.memory_space<vmem>>, vector<1x128xf32>
    %4 = vector.broadcast %3 : vector<1x128xf32> to vector<8x128xf32>
    %5 = arith.addf %2, %4 : vector<8x128xf32>
    %cst_5 = arith.constant 0.000000e+00 : f32
    %6 = vector.broadcast %cst_5 : f32 to vector<8x128xf32>
    %7 = arith.maximumf %5, %6 : vector<8x128xf32>
    %8 = arith.truncf %7 : vector<8x128xf32> to vector<8x128xbf16>
    %c0_6 = arith.constant 0 : index
    %c0_7 = arith.constant 0 : index
    %9 = vector.load %arg4[%c0_6, %c0_7] : memref<128x128xbf16, #tpu.memory_space<vmem>>, vector<128x128xbf16>
    %cst_8 = arith.constant dense<0.000000e+00> : vector<8x128xf32>
    %10 = tpu.matmul %8, %9, %cst_8 {dimension_numbers = #tpu.dot_dimension_numbers<[1], [0], [0], [1], [0, 0, 1, 1], [], []>} : vector<8x128xbf16>, vector<128x128xbf16>, vector<8x128xf32> -> vector<8x128xf32>
    %c0_9 = arith.constant 0 : index
    %c0_10 = arith.constant 0 : index
    %11 = vector.load %arg5[%c0_9, %c0_10] : memref<1x128xf32, #tpu.memory_space<vmem>>, vector<1x128xf32>
    %12 = vector.broadcast %11 : vector<1x128xf32> to vector<8x128xf32>
    %13 = arith.addf %10, %12 : vector<8x128xf32>
    %cst_11 = arith.constant dense<0xFF800000> : vector<8xf32>
    %14 = vector.multi_reduction <maximumf>, %13, %cst_11 [1] : vector<8x128xf32> to vector<8xf32>
    %15 = vector.shape_cast %14 : vector<8xf32> to vector<8x1xf32>
    %16 = vector.broadcast %15 : vector<8x1xf32> to vector<8x128xf32>
    %17 = arith.subf %13, %16 : vector<8x128xf32>
    %18 = math.exp %17 : vector<8x128xf32>
    %cst_12 = arith.constant dense<0.000000e+00> : vector<8xf32>
    %19 = vector.multi_reduction <add>, %18, %cst_12 [1] : vector<8x128xf32> to vector<8xf32>
    %20 = vector.shape_cast %19 : vector<8xf32> to vector<8x1xf32>
    %cst_13 = arith.constant 1.000000e+00 : f32
    %21 = vector.broadcast %cst_13 : f32 to vector<8x1xf32>
    %22 = arith.divf %21, %20 : vector<8x1xf32>
    %23 = vector.extract_strided_slice %18 {offsets = [0, 0], sizes = [8, 2], strides = [1, 1]} : vector<8x128xf32> to vector<8x2xf32>
    %24 = vector.broadcast %22 : vector<8x1xf32> to vector<8x2xf32>
    %25 = arith.mulf %23, %24 : vector<8x2xf32>
    %c0_14 = arith.constant 0 : index
    %c0_15 = arith.constant 0 : index
    %26 = vector.load %arg6[%c0_14, %c0_15] : memref<8x2xf32, #tpu.memory_space<vmem>>, vector<8x2xf32>
    tpu.vector_store %arg6[%c0_14, %c0_15], %25 {strides = array<i32>} : memref<8x2xf32, #tpu.memory_space<vmem>>, vector<8x2xf32>,
    return
  }
  func.func @transform_0(%arg0: i32) -> (i32, i32) {
    %c0_i32 = arith.constant 0 : i32
    %c0_i32_0 = arith.constant 0 : i32
    return %arg0, %c0_i32 : i32, i32
  }
  func.func @transform_1(%arg0: i32) -> (i32, i32) {
    %c0_i32 = arith.constant 0 : i32
    %c0_i32_0 = arith.constant 0 : i32
    %c0_i32_1 = arith.constant 0 : i32
    return %c0_i32, %c0_i32_0 : i32, i32
  }
  func.func @transform_2(%arg0: i32) -> (i32, i32) {
    %c0_i32 = arith.constant 0 : i32
    %c0_i32_0 = arith.constant 0 : i32
    %c0_i32_1 = arith.constant 0 : i32
    return %c0_i32, %c0_i32_0 : i32, i32
  }
  func.func @transform_3(%arg0: i32) -> (i32, i32) {
    %c0_i32 = arith.constant 0 : i32
    %c0_i32_0 = arith.constant 0 : i32
    %c0_i32_1 = arith.constant 0 : i32
    return %c0_i32, %c0_i32_0 : i32, i32
  }
  func.func @transform_4(%arg0: i32) -> (i32, i32) {
    %c0_i32 = arith.constant 0 : i32
    %c0_i32_0 = arith.constant 0 : i32
    %c0_i32_1 = arith.constant 0 : i32
    return %c0_i32, %c0_i32_0 : i32, i32
  }
  func.func @transform_5(%arg0: i32) -> (i32, i32) {
    %c0_i32 = arith.constant 0 : i32
    %c0_i32_0 = arith.constant 0 : i32
    return %arg0, %c0_i32 : i32, i32
  }
}

</mosaic_0001>

<bundles_post_ra>
// kernel: actor_forward.1
= control target key start
LH: loop header
LB: loop body
LE: loop exit
PB: predicated region body
PF: predicated region fallthrough
CT: control target
= control target key end

     0   :  { %10 = vsyncpa [#allocation3], 0  ;;  %s341_s18 = smov [#allocation2]   ;;  %s403_s0 = inlined_call_operand.vmem [shape: f32[8,4], index: 0, kind: input, shape index: {}]   ;;  %s404_s1 = inlined_call_operand.vmem [shape: f32[4,128], index: 1, kind: input, shape index: {}]   ;;  %s405_s2 = inlined_call_operand.vmem [shape: f32[1,128], index: 2, kind: input, shape index: {}]   ;;  %s406_s3 = inlined_call_operand.hbm [shape: bf16[128,128], index: 3, kind: input, shape index: {}]   ;;  %s407_s4 = inlined_call_operand.vmem [shape: f32[1,128], index: 4, kind: input, shape index: {}]   ;;  %s408_s5 = inlined_call_operand.vmem [shape: f32[8,2], index: 5, kind: output, shape index: {}]  }
   0x1   :  { %s22_s19 = sshll.u32 %s341_s18, 4  ;;  %s317_s22 = scalar_lea.hbm %s406_s3, 1024  ;;  %s23_s19 = int_to_ptr.vmem [resolvable:$true] %s22_s19 }
   0x2   :  { %p318_p0 = scmp.ne.s32.totalorder %s406_s3, %s317_s22  ;;  %p321_p1 = scmp.lt.u32.totalorder %s317_s22, %s406_s3 }
   0x4   :  { %p323_p2 = pnand %p321_p1, %p318_p0 }
   0x6   :  { %326 = shalt.err (!%p323_p2)
}
   0x7   :  { %s327_s27 = scalar_lea.vmem %s23_s19, 1024  ;;  %p332_p4 = scmp.lt.s32.totalorder %s23_s19, %s23_s19 }
   0x8   :  { %p328_p3 = scmp.ne.s32.totalorder %s23_s19, %s327_s27  ;;  %p333_p5 = scmp.lt.s32.totalorder %s327_s27, %s327_s27 }
   0xa   :  { %p334_p6 = por %p333_p5, %p332_p4 }
   0xc   :  { %p335_p7 = pnand %p334_p6, %p328_p3 }
   0xe   :  { %338 = shalt.err (!%p335_p7)
}
   0xf   :  { %s342_s28 = smov 64   ;;  %s343_s29 = smov 4  }
  0x10   :  { %28 = dma.hbm_to_vmem [thread:$0]  %s406_s3, 1024, %s23_s19, [#allocation3], %s342_s28, %s342_s28, %s343_s29  }
  0x11   :  { %339 = dma.done.wait [#allocation3], 1024  }
  0x12   :  { %340 = vsyncadd [#allocation3], 4294966272  ;;  %v344_v0 = vmov 0.0   ;;  %vm345_vm0 = vmmov 0   ;;  %vm48_vm1 = vcmask 1043456   ;;  %vm44_vm2 = vcmask 31744  }
  0x13   :  { %275 = vmatprep.subr.mxu0 %v344_v0  ;;  %277 = vmatprep.mubr.msk.f32.mxu0 %vm345_vm0, %v344_v0  ;;  %v36_v1 = vld [vmem:[%s404_s1] sm:$0xf]  ;;  %v306_v4 = vld [vmem:[#allocation2 + $0x8] sm:$0xff]   ;;  %v307_v5 = vld [vmem:[#allocation2 + $0x10] sm:$0xff]   ;;  %vm245_vm3 = vcmask 15360  }
  0x14   :  { %280 = vmatprep.subr.bf16.mxu1 %v344_v0  ;;  %296 = vmatprep.mubr.msk.bf16.mxu1 %vm345_vm0, %v344_v0  ;;  %v35_v2 = vld [vmem:[%s403_s0] sm:$0xff]  ;;  %v308_v6 = vld [vmem:[#allocation2 + $0x18] sm:$0xff]   ;;  %v310_v8 = vld [vmem:[#allocation2 + $0x28] sm:$0xff]  }
  0x15   :  { %276 = vmatpush3.msk.msra.mxu0 %vm48_vm1, %v36_v1  ;;  %v305_v3 = vld [vmem:[#allocation2] sm:$0xff]   ;;  %v311_v9 = vld [vmem:[#allocation2 + $0x30] sm:$0xff]   ;;  %v312_v10 = vld [vmem:[#allocation2 + $0x38] sm:$0xff]  }
  0x16   :  { %278 = vmatmul.mubr.msk.f32.vlgmr.msra.gmra.mrb[0].mxu0 %vm44_vm2, %v35_v2  ;;  %281 = vmatpush3.bf16.msra.mxu1 %v305_v3  ;;  %v309_v7 = vld [vmem:[#allocation2 + $0x20] sm:$0xff]  }
  0x17   :  { %282 = vmatprep.subr.bf16.mxu1 %v344_v0  ;;  %v252_v11 = vld [vmem:[%s405_s2] ss:$0 sm:$0xff] }
  0x18   :  { %v255_v17 = vld [vmem:[%s407_s4] ss:$0 sm:$0xff] }
  0x1a   :  { %283 = vmatpush3.bf16.msra.mxu1 %v306_v4 }
  0x1b   :  { %284 = vmatprep.subr.bf16.mxu1 %v344_v0 }
  0x1e   :  { %285 = vmatpush3.bf16.msra.mxu1 %v307_v5 }
  0x1f   :  { %286 = vmatprep.subr.bf16.mxu1 %v344_v0 }
  0x22   :  { %287 = vmatpush3.bf16.msra.mxu1 %v308_v6 }
  0x23   :  { %288 = vmatprep.subr.bf16.mxu1 %v344_v0 }
  0x26   :  { %289 = vmatpush3.bf16.msra.mxu1 %v309_v7 }
  0x27   :  { %290 = vmatprep.subr.bf16.mxu1 %v344_v0 }
  0x2a   :  { %291 = vmatpush3.bf16.msra.mxu1 %v310_v8 }
  0x2b   :  { %292 = vmatprep.subr.bf16.mxu1 %v344_v0 }
  0x2e   :  { %293 = vmatpush3.bf16.msra.mxu1 %v311_v9 }
  0x2f   :  { %294 = vmatprep.subr.bf16.mxu1 %v344_v0 }
  0x32   :  { %295 = vmatpush3.bf16.msra.mxu1 %v312_v10 }
  0xe9   :  { %v118_v12 = vpop.f32.mrb[0].mxu0 }
  0xea   :  { %v119_v13 = vadd.f32 %v252_v11, %v118_v12  ;;  %v279_v14 = vpop.f32.mrb[1].mxu0 }
  0xec   :  { %v122_v15 = vmax.f32 %v119_v13, 0.0 }
  0xee   :  { %v123_v16 = vpack.c.bf16 %v122_v15, %v122_v15 }
  0xf0   :  { %297 = vmatmul.mubr.bf16.vlgmr.msra.gmra.mrb[0].mxu1 %v123_v16 }
 0x1c3   :  { %v229_v18 = vpop.f32.mrb[0].mxu1 }
 0x1c4   :  { %v230_v19 = vadd.f32 %v255_v17, %v229_v18  ;;  %v298_v20 = vpop.f32.mrb[1].mxu1 }
 0x1c5   :  { %v232_v21 = vpop.f32.mrb[2].mxu1 }
 0x1c6   :  { %235 = vmax.xlane.f32.xlu0 %v230_v19  ;;  %v299_v22 = vpop.f32.mrb[3].mxu1 }
 0x253   :  { %v236_v23 = vpop.xlane.xlu0 %235 }
 0x254   :  { %v237_v24 = vsub.f32 %v230_v19, %v236_v23 }
 0x256   :  { %v238_v25 = vmul.f32 1.442695, %v237_v24 }
 0x258   :  { %313 = vpow2.f32 %v238_v25 }
 0x262   :  { %v314_v26 = vpop.eup %313 }
 0x263   :  { %240 = vadd.xlane.f32.xlu0 %v314_v26 }
 0x2f0   :  { %v241_v27 = vpop.xlane.xlu0 %240 }
 0x2f1   :  { %315 = vrcp.f32 %v241_v27 }
 0x2fb   :  { %v316_v28 = vpop.eup %315 }
 0x2fc   :  { %v244_v29 = vmul.f32 %v316_v28, %v314_v26 }
 0x2fe   :  { %246 = vst.msk [vmem:[%s408_s5] sm:$0xff] %vm245_vm3, %v244_v29 }
 0x2ff   :  { %251 = vsyncpa [#allocation3], 1 }

</bundles_post_ra>
